<compile_context>
chip_gen: v7x
topology: tpu7x:2x2x1
jax: 0.10.0
libtpu: 0.0.40
codegen_flags: <defaults>
</compile_context>

<pallas_src>
import functools
import math

import jax
import jax.numpy as jnp
from jax.experimental import pallas as pl
from jax.experimental.pallas import tpu as pltpu

# Finite "minus infinity": avoids inf - inf = NaN in the online logsumexp while
# still underflowing to exp(...) == 0 in f32.
_NEG_INF = -1e30
_DEFAULT_VMEM_BYTES = 64 * 1024 * 1024  # conservative fallback (v7x per-TC)


def _round_up(x, m):
    return ((x + m - 1) // m) * m


def _round_down(x, m):
    return (x // m) * m


def _vmem_capacity_bytes():
    """Per-core VMEM capacity, with a conservative fallback."""
    try:
        info = pltpu.get_tpu_info()
        cap = getattr(info, "vmem_capacity_bytes", None)
        if cap:
            return int(cap)
    except Exception:
        pass
    return _DEFAULT_VMEM_BYTES


def _fused_lm_head_kernel(x_ref, w_ref, b_ref, out_ref, acc_ref, m_ref, l_ref):
    """One (row-tile i, vocab-tile j) grid step.

    x_ref:   (TM, H)      activations (compute dtype, e.g. bf16)
    w_ref:   (H, TV)      weight tile (compute dtype)
    b_ref:   (1, VPAD)    full bias, f32 (grid-invariant; padded lanes = -1e30)
    out_ref: (TM, VPAD)   log-prob slab (resident across j, written at last j)
    acc_ref: (TM, VPAD)   f32 scratch slab of raw logits
    m_ref:   (TM, 1)      f32 scratch: running max
    l_ref:   (TM, 1)      f32 scratch: running sum of exp
    """
    j = pl.program_id(1)
    tv = w_ref.shape[1]

    @pl.when(j == 0)
    def _init():
        m_ref[...] = jnp.full(m_ref.shape, _NEG_INF, m_ref.dtype)
        l_ref[...] = jnp.zeros(l_ref.shape, l_ref.dtype)

    col0 = pl.multiple_of(j * tv, 128)

    # MXU matmul in the streaming dtype (bf16 by default), f32 accumulation.
    logits = jnp.dot(x_ref[...], w_ref[...], preferred_element_type=jnp.float32)
    logits = logits + b_ref[:, pl.ds(col0, tv)]          # bias is f32

    # Stash the raw f32 logits in the resident VMEM slab (no HBM traffic).
    acc_ref[:, pl.ds(col0, tv)] = logits

    # Online logsumexp update (all f32).
    m_prev = m_ref[...]
    m_new = jnp.maximum(m_prev, jnp.max(logits, axis=-1, keepdims=True))
    l_ref[...] = (l_ref[...] * jnp.exp(m_prev - m_new)
                  + jnp.sum(jnp.exp(logits - m_new), axis=-1, keepdims=True))
    m_ref[...] = m_new

    @pl.when(j == pl.num_programs(1) - 1)
    def _finalize():
        lse = m_ref[...] + jnp.log(l_ref[...])
        # Subtract in f32, single cast, single lane-dense HBM write.
        out_ref[...] = (acc_ref[...] - lse).astype(out_ref.dtype)


@functools.partial(
    jax.jit,
    static_argnames=("tile_m", "tv", "compute_dtype", "out_dtype",
                     "vmem_limit_bytes"),
)
def _lm_head_call(h, w, b, *, tile_m, tv, compute_dtype, out_dtype,
                  vmem_limit_bytes):
    B, S, H = h.shape
    _, V = w.shape
    rows = B * S

    rows_pad = _round_up(rows, tile_m)
    v_pad = _round_up(V, tv)

    # Pad rows with zeros (discarded later) and the vocab axis with
    # zero-weights / -1e30 bias so padded lanes never affect the normalizer.
    x2d = h.reshape(rows, H).astype(compute_dtype)
    if rows_pad != rows:
        x2d = jnp.pad(x2d, ((0, rows_pad - rows), (0, 0)))
    wp = w.astype(compute_dtype)
    bp = b.astype(jnp.float32)
    if v_pad != V:
        wp = jnp.pad(wp, ((0, 0), (0, v_pad - V)))
        bp = jnp.pad(bp, (0, v_pad - V), constant_values=_NEG_INF)
    bp = bp.reshape(1, v_pad)

    grid = (rows_pad // tile_m, v_pad // tv)

    out = pl.pallas_call(
        _fused_lm_head_kernel,
        out_shape=jax.ShapeDtypeStruct((rows_pad, v_pad), out_dtype),
        grid_spec=pltpu.PrefetchScalarGridSpec(
            num_scalar_prefetch=0,
            grid=grid,
            in_specs=[
                pl.BlockSpec((tile_m, H), lambda i, j: (i, 0)),   # x (j-invariant)
                pl.BlockSpec((H, tv), lambda i, j: (0, j)),       # W tile
                pl.BlockSpec((1, v_pad), lambda i, j: (0, 0)),    # bias: one DMA total
            ],
            out_specs=pl.BlockSpec((tile_m, v_pad), lambda i, j: (i, 0)),
            scratch_shapes=[
                pltpu.VMEM((tile_m, v_pad), jnp.float32),         # resident logits slab
                pltpu.VMEM((tile_m, 1), jnp.float32),             # running max
                pltpu.VMEM((tile_m, 1), jnp.float32),             # running sum-exp
            ],
        ),
        compiler_params=pltpu.CompilerParams(
            dimension_semantics=("parallel", "arbitrary"),
            vmem_limit_bytes=vmem_limit_bytes,
        ),
    )(x2d, wp, bp)

    return out[:rows, :V].reshape(B, S, V)


def masked_lm_head(h, w, b, *, tile_rows=None, tile_v=None,
                   compute_dtype=jnp.bfloat16, out_dtype=jnp.bfloat16,
                   vmem_limit_bytes=None):
    """log_softmax(h @ w + b, axis=-1) as one fused Pallas TPU kernel.

    h: (B, S, H); w: (H, V); b: (V,)  ->  (B, S, V) log-probs in `out_dtype`.
    Tile sizes / VMEM limit are auto-derived from the current chip's VMEM
    capacity unless given explicitly.
    """
    B, S, H = h.shape
    Hw, V = w.shape
    if Hw != H:
        raise ValueError(f"weight hidden dim {Hw} != activation hidden dim {H}")
    rows = B * S

    cap = _vmem_capacity_bytes()
    if vmem_limit_bytes is None:
        # 100 MiB on 128-MiB chips (v5e/v6e), ~57 MiB on 64-MiB v7x.
        vmem_limit_bytes = min(int(cap * 0.9), 100 * 1024 * 1024)
    budget = int(vmem_limit_bytes * 0.85)   # headroom for compiler scratch

    # Vocab (N) tile for W streaming; keep it a multiple of 128.
    tv = 2048 if tile_v is None else int(tile_v)
    tv = max(128, _round_down(tv, 128))
    tv = min(tv, _round_up(V, 128))
    v_pad = _round_up(V, tv)

    cbytes = jnp.dtype(compute_dtype).itemsize
    obytes = jnp.dtype(out_dtype).itemsize

    # VMEM bytes per resident row of a row tile: f32 logits slab + double-
    # buffered output block + double-buffered x block (+ tiny m/l scratch).
    per_row = v_pad * 4 + 2 * v_pad * obytes + 2 * H * cbytes + 8
    fixed = 2 * H * tv * cbytes + 2 * v_pad * 4 + (128 << 10)

    tm_cap = 1024 if tile_rows is None else int(tile_rows)
    tm_fit = max(8, (budget - fixed) // per_row)
    tile_m = min(tm_cap, tm_fit, _round_up(rows, 8))
    # Keep >= 2 row tiles when possible so both TensorCores get work (megacore).
    if rows > 8:
        tile_m = min(tile_m, _round_up((rows + 1) // 2, 8))
    tile_m = max(8, _round_down(tile_m, 8))
    if tile_m >= 256:
        tile_m = _round_down(tile_m, 128)   # keep the MXU M-dim well aligned

    return _lm_head_call(h, w, b, tile_m=int(tile_m), tv=int(tv),
                         compute_dtype=compute_dtype, out_dtype=out_dtype,
                         vmem_limit_bytes=int(vmem_limit_bytes))


def bertlm_forward(h_bert, attn_list, w, b, **head_kwargs):
    """Mirrors BERTLM.forward: returns (log_probs, attn_list).

    `h_bert` plays the role of the BERT encoder output x."""
    # TODO(synk): the BERT encoder backbone class is not provided in the
    # reference source; its output is taken as the input here and the
    # attention list is passed through unchanged.
    return masked_lm_head(h_bert, w, b, **head_kwargs), attn_list


def xavier_uniform(key, shape, dtype=jnp.float32):
    fan_in, fan_out = shape[0], shape[1]
    limit = math.sqrt(6.0 / (fan_in + fan_out))
    return jax.random.uniform(key, shape, dtype, minval=-limit, maxval=limit)


if __name__ == "__main__":
    # Small shapes consistent with the module: hidden=32, vocab=500 (deliberately
    # NOT a multiple of 128, to exercise the padding/masking path), B=2, S=8.
    B, S, H, V = 2, 8, 32, 500

    key = jax.random.PRNGKey(0)
    k_h, k_w, k_b = jax.random.split(key, 3)

    # Synthetic "BERT output" activations and MaskedLanguageModel parameters.
    h_bert = jax.random.normal(k_h, (B, S, H), dtype=jnp.float32)
    # nn.Linear(hidden, vocab) stores weight as (V, H); the math is x @ W.T.
    w_torch = xavier_uniform(k_w, (V, H))          # xavier init, as in init_model
    w = w_torch.T                                  # (H, V) layout for x @ W
    b = jax.random.uniform(k_b, (V,), jnp.float32,
                           minval=-1.0 / math.sqrt(H),
                           maxval=1.0 / math.sqrt(H))
    attn_list = []                                 # attention maps pass through.

    # Reference computed with the same bf16-rounded operands the kernel streams.
    h_bf = h_bert.astype(jnp.bfloat16).astype(jnp.float32)
    w_bf = w.astype(jnp.bfloat16).astype(jnp.float32)
    logits_ref = jnp.einsum("bsh,hv->bsv", h_bf, w_bf,
                            precision=jax.lax.Precision.HIGHEST) + b
    ref = jax.nn.log_softmax(logits_ref, axis=-1)

    # 1) f32 output with small explicit tiles: exercises multiple row tiles AND
    #    the multi-vocab-tile online-logsumexp + vocab-padding path.
    log_probs, attn_out = bertlm_forward(h_bert, attn_list, w, b,
                                         tile_rows=8, tile_v=128,
                                         out_dtype=jnp.float32)
    log_probs = jax.block_until_ready(log_probs)
    assert log_probs.shape == (B, S, V)
    assert attn_out == attn_list
    max_err = float(jnp.max(jnp.abs(log_probs - ref)))
    assert jnp.allclose(log_probs, ref, atol=1e-4, rtol=1e-4), max_err
    # log-softmax rows must sum (in probability space) to 1.
    assert jnp.allclose(jnp.exp(log_probs).sum(-1), 1.0, atol=1e-3)

    # 2) Default configuration (auto-sized tiles, bf16 output): the logsumexp
    #    subtraction happens in f32 before the single bf16 cast, so only the
    #    final rounding remains.
    lp_bf16, _ = bertlm_forward(h_bert, attn_list, w, b)
    lp_bf16 = jax.block_until_ready(lp_bf16)
    assert lp_bf16.shape == (B, S, V)
    assert lp_bf16.dtype == jnp.bfloat16
    max_err_bf16 = float(jnp.max(jnp.abs(lp_bf16.astype(jnp.float32) - ref)))
    assert max_err_bf16 < 6e-2, max_err_bf16
    assert jnp.allclose(jnp.exp(lp_bf16.astype(jnp.float32)).sum(-1), 1.0,
                        atol=2e-2)

    print("KERNEL_OK")
</pallas_src>

<mosaic_0001>
module attributes {stable_mosaic.version = 11 : i64} {
  func.func @_fused_lm_head_kernel(%arg0: i32, %arg1: i32, %arg2: memref<8x32xbf16, #tpu.memory_space<vmem>>, %arg3: memref<32x128xbf16, #tpu.memory_space<vmem>>, %arg4: memref<1x512xf32, #tpu.memory_space<vmem>>, %arg5: memref<8x512xf32, #tpu.memory_space<vmem>>, %arg6: memref<8x512xf32, #tpu.memory_space<vmem>>, %arg7: memref<8x1xf32, #tpu.memory_space<vmem>>, %arg8: memref<8x1xf32, #tpu.memory_space<vmem>>) attributes {dimension_semantics = [#tpu.dimension_semantics<parallel>, #tpu.dimension_semantics<arbitrary>], iteration_bounds = array<i64: 2, 4>, scalar_prefetch = 0 : i64, scratch_operands = 3 : i64, tpu.core_type = #tpu.core_type<tc>, window_params = [{transform_indices = @transform_0, window_bounds = array<i64: 8, 32>}, {transform_indices = @transform_1, window_bounds = array<i64: 32, 128>}, {pipeline_mode = #tpu.pipeline_mode<synchronous>, transform_indices = @transform_2, window_bounds = array<i64: 1, 512>}, {transform_indices = @transform_3, window_bounds = array<i64: 8, 512>}]} {
    %c0_i32 = arith.constant 0 : i32
    %0 = arith.cmpi eq, %arg1, %c0_i32 : i32
    %1 = arith.extui %0 : i1 to i32
    %c0_i32_0 = arith.constant 0 : i32
    %2 = arith.cmpi ne, %1, %c0_i32_0 : i32
    scf.if %2 {
      %cst_17 = arith.constant -1.000000e+30 : f32
      %33 = vector.broadcast %cst_17 : f32 to vector<8x1xf32>
      %c0_18 = arith.constant 0 : index
      %c0_19 = arith.constant 0 : index
      %34 = vector.load %arg7[%c0_18, %c0_19] : memref<8x1xf32, #tpu.memory_space<vmem>>, vector<8x1xf32>
      tpu.vector_store %arg7[%c0_18, %c0_19], %33 {strides = array<i32>} : memref<8x1xf32, #tpu.memory_space<vmem>>, vector<8x1xf32>,
      %cst_20 = arith.constant 0.000000e+00 : f32
      %35 = vector.broadcast %cst_20 : f32 to vector<8x1xf32>
      %c0_21 = arith.constant 0 : index
      %c0_22 = arith.constant 0 : index
      %36 = vector.load %arg8[%c0_21, %c0_22] : memref<8x1xf32, #tpu.memory_space<vmem>>, vector<8x1xf32>
      tpu.vector_store %arg8[%c0_21, %c0_22], %35 {strides = array<i32>} : memref<8x1xf32, #tpu.memory_space<vmem>>, vector<8x1xf32>,
    } else {
    }
    %c128_i32 = arith.constant 128 : i32
    %3 = arith.muli %arg1, %c128_i32 : i32
    %4 = tpu.assume_multiple %3, 128 : i32
    %c0 = arith.constant 0 : index
    %c0_1 = arith.constant 0 : index
    %5 = vector.load %arg2[%c0, %c0_1] : memref<8x32xbf16, #tpu.memory_space<vmem>>, vector<8x32xbf16>
    %c0_2 = arith.constant 0 : index
    %c0_3 = arith.constant 0 : index
    %6 = vector.load %arg3[%c0_2, %c0_3] : memref<32x128xbf16, #tpu.memory_space<vmem>>, vector<32x128xbf16>
    %cst = arith.constant dense<0.000000e+00> : vector<8x128xf32>
    %7 = tpu.matmul %5, %6, %cst {dimension_numbers = #tpu.dot_dimension_numbers<[1], [0], [0], [1], [0, 0, 1, 1], [], []>} : vector<8x32xbf16>, vector<32x128xbf16>, vector<8x128xf32> -> vector<8x128xf32>
    %c0_4 = arith.constant 0 : index
    %8 = arith.index_cast %4 : i32 to index
    %9 = vector.load %arg4[%c0_4, %8] : memref<1x512xf32, #tpu.memory_space<vmem>>, vector<1x128xf32>
    %10 = vector.broadcast %9 : vector<1x128xf32> to vector<8x128xf32>
    %11 = arith.addf %7, %10 : vector<8x128xf32>
    %c0_5 = arith.constant 0 : index
    %12 = arith.index_cast %4 : i32 to index
    %13 = vector.load %arg6[%c0_5, %12] : memref<8x512xf32, #tpu.memory_space<vmem>>, vector<8x128xf32>
    tpu.vector_store %arg6[%c0_5, %12], %11 {strides = array<i32>} : memref<8x512xf32, #tpu.memory_space<vmem>>, vector<8x128xf32>,
    %c0_6 = arith.constant 0 : index
    %c0_7 = arith.constant 0 : index
    %14 = vector.load %arg7[%c0_6, %c0_7] : memref<8x1xf32, #tpu.memory_space<vmem>>, vector<8x1xf32>
    %cst_8 = arith.constant dense<0xFF800000> : vector<8xf32>
    %15 = vector.multi_reduction <maximumf>, %11, %cst_8 [1] : vector<8x128xf32> to vector<8xf32>
    %16 = vector.shape_cast %15 : vector<8xf32> to vector<8x1xf32>
    %17 = arith.maximumf %14, %16 : vector<8x1xf32>
    %c0_9 = arith.constant 0 : index
    %c0_10 = arith.constant 0 : index
    %18 = vector.load %arg8[%c0_9, %c0_10] : memref<8x1xf32, #tpu.memory_space<vmem>>, vector<8x1xf32>
    %19 = arith.subf %14, %17 : vector<8x1xf32>
    %20 = math.exp %19 : vector<8x1xf32>
    %21 = arith.mulf %18, %20 : vector<8x1xf32>
    %22 = vector.broadcast %17 : vector<8x1xf32> to vector<8x128xf32>
    %23 = arith.subf %11, %22 : vector<8x128xf32>
    %24 = math.exp %23 : vector<8x128xf32>
    %cst_11 = arith.constant dense<0.000000e+00> : vector<8xf32>
    %25 = vector.multi_reduction <add>, %24, %cst_11 [1] : vector<8x128xf32> to vector<8xf32>
    %26 = vector.shape_cast %25 : vector<8xf32> to vector<8x1xf32>
    %27 = arith.addf %21, %26 : vector<8x1xf32>
    %c0_12 = arith.constant 0 : index
    %c0_13 = arith.constant 0 : index
    %28 = vector.load %arg8[%c0_12, %c0_13] : memref<8x1xf32, #tpu.memory_space<vmem>>, vector<8x1xf32>
    tpu.vector_store %arg8[%c0_12, %c0_13], %27 {strides = array<i32>} : memref<8x1xf32, #tpu.memory_space<vmem>>, vector<8x1xf32>,
    %c0_14 = arith.constant 0 : index
    %c0_15 = arith.constant 0 : index
    %29 = vector.load %arg7[%c0_14, %c0_15] : memref<8x1xf32, #tpu.memory_space<vmem>>, vector<8x1xf32>
    tpu.vector_store %arg7[%c0_14, %c0_15], %17 {strides = array<i32>} : memref<8x1xf32, #tpu.memory_space<vmem>>, vector<8x1xf32>,
    %c3_i32 = arith.constant 3 : i32
    %30 = arith.cmpi eq, %arg1, %c3_i32 : i32
    %31 = arith.extui %30 : i1 to i32
    %c0_i32_16 = arith.constant 0 : i32
    %32 = arith.cmpi ne, %31, %c0_i32_16 : i32
    scf.if %32 {
      %c0_17 = arith.constant 0 : index
      %c0_18 = arith.constant 0 : index
      %33 = vector.load %arg7[%c0_17, %c0_18] : memref<8x1xf32, #tpu.memory_space<vmem>>, vector<8x1xf32>
      %c0_19 = arith.constant 0 : index
      %c0_20 = arith.constant 0 : index
      %34 = vector.load %arg8[%c0_19, %c0_20] : memref<8x1xf32, #tpu.memory_space<vmem>>, vector<8x1xf32>
      %35 = math.log %34 : vector<8x1xf32>
      %36 = arith.addf %33, %35 : vector<8x1xf32>
      %c0_21 = arith.constant 0 : index
      %c0_22 = arith.constant 0 : index
      %37 = vector.load %arg6[%c0_21, %c0_22] : memref<8x512xf32, #tpu.memory_space<vmem>>, vector<8x512xf32>
      %38 = vector.broadcast %36 : vector<8x1xf32> to vector<8x512xf32>
      %39 = arith.subf %37, %38 : vector<8x512xf32>
      %c0_23 = arith.constant 0 : index
      %c0_24 = arith.constant 0 : index
      %40 = vector.load %arg5[%c0_23, %c0_24] : memref<8x512xf32, #tpu.memory_space<vmem>>, vector<8x512xf32>
      tpu.vector_store %arg5[%c0_23, %c0_24], %39 {strides = array<i32>} : memref<8x512xf32, #tpu.memory_space<vmem>>, vector<8x512xf32>,
    } else {
    }
    return
  }
  func.func @transform_0(%arg0: i32, %arg1: i32) -> (i32, i32) {
    %c0_i32 = arith.constant 0 : i32
    %c0_i32_0 = arith.constant 0 : i32
    return %arg0, %c0_i32 : i32, i32
  }
  func.func @transform_1(%arg0: i32, %arg1: i32) -> (i32, i32) {
    %c0_i32 = arith.constant 0 : i32
    %c0_i32_0 = arith.constant 0 : i32
    return %c0_i32, %arg1 : i32, i32
  }
  func.func @transform_2(%arg0: i32, %arg1: i32) -> (i32, i32) {
    %c0_i32 = arith.constant 0 : i32
    %c0_i32_0 = arith.constant 0 : i32
    %c0_i32_1 = arith.constant 0 : i32
    return %c0_i32, %c0_i32_0 : i32, i32
  }
  func.func @transform_3(%arg0: i32, %arg1: i32) -> (i32, i32) {
    %c0_i32 = arith.constant 0 : i32
    %c0_i32_0 = arith.constant 0 : i32
    return %arg0, %c0_i32 : i32, i32
  }
}

</mosaic_0001>

<bundles_post_ra>
// kernel: _lm_head_call.1
= control target key start
LH: loop header
LB: loop body
LE: loop exit
PB: predicated region body
PF: predicated region fallthrough
CT: control target
= control target key end

     0   :  { %s659_s12 = smov 0   ;;  %s661_s13 = smov 0   ;;  %s762_s0 = inlined_call_operand.vmem [shape: bf16[16,32], index: 0, kind: input, shape index: {}]   ;;  %s763_s1 = inlined_call_operand.vmem [shape: bf16[32,512], index: 1, kind: input, shape index: {}]   ;;  %s764_s2 = inlined_call_operand.vmem [shape: f32[1,512], index: 2, kind: input, shape index: {}]   ;;  %s765_s3 = inlined_call_operand.vmem [shape: f32[16,512], index: 3, kind: output, shape index: {}]  }
   0x1   :  { %s663_s14 = smov 0   ;;  %s665_s15 = smov 0  }
   0x2   :  { %s667_s16 = smov 0   ;;  %s669_s17 = smov 0  }
   0x3   :  { %s671_s18 = smov 0  }
   0x4 LB: > { %s22_s19 = sadd.s32 1, %s623_s16  ;;  %s25_s20 = sadd.s32 1, %s627_s17  ;;  %s631_s18 = sphi %s671_s18, %s13_s18   ;;  %s627_s17 = sphi %s669_s17, %s771_s17   ;;  %s623_s16 = sphi %s667_s16, %s770_s16   ;;  %s619_s15 = sphi %s665_s15, %s769_s15   ;;  %s615_s14 = sphi %s663_s14, %s768_s14   ;;  %s611_s13 = sphi %s661_s13, %s767_s13   ;;  %s607_s12 = sphi %s659_s12, %s766_s12  }
   0x5   : > { %p23_p0 = scmp.ge.s32.totalorder %s22_s19, 4  ;;  %s58_s21 = sadd.s32 1, %s611_s13 }
   0x6   : > { %p65_p1 = scmp.ne.s32.totalorder %s611_s13, %s607_s12  ;;  %p66_p2 = scmp.eq.s32.totalorder %s631_s18, 0 }
   0x7   : > { %s773_s19 = smov (%p23_p0, %s22_s19), 0  ;;  %s775_s20 = smov (!%p23_p0, %s25_s20), %s627_s17 }
   0x8   : > { %s55_s22 = ssub.s32 %s623_s16, %s773_s19  ;;  %p67_p3 = por %p66_p2, %p65_p1 }
   0x9   : > { %p27_p4 = scmp.ge.s32.totalorder %s775_s20, 2  ;;  %p56_p5 = scmp.eq.s32.totalorder %s55_s22, 0 }
   0xa   : > { %p475_p6 = scmp.ge.s32.totalorder %s631_s18, 8 }
   0xb   : > { %s777_s20 = smov (%p27_p4, %s775_s20), 0 }
   0xc   : > { %s708_s23 = scalar_select %p56_p5, %s611_s13, %s58_s21  }
   0xd   : > { %141 = sbr.rel (%p475_p6) target bundleno = 27 (0x1b), region = 20 }
  0x14   : > { %151 = sbr.rel (!%p67_p3) target bundleno = 27 (0x1b), region = 28  ;;  %s153_s24 = sand.u32 (%p67_p3), 1, %s611_s13  }
  0x15   : > { %s477_s25 = sshll.u32 (%p67_p3), %s623_s16, 2  ;;  %s476_s26 = sshll.u32 (%p67_p3), %s153_s24, 4 }
  0x16   : > { %s157_s29 = scalar_lea.vmem (%p67_p3), %s763_s1, %s477_s25  ;;  %s155_s30 = scalar_lea.vmem (%p67_p3), [#allocation5], %s476_s26 }
  0x17   : > { %v173_v0 = vld [vmem:[%s157_s29] sm:$0xf] (%p67_p3)  ;;  %v175_v1 = vld [vmem:[%s157_s29 + $0x10] sm:$0xf] (%p67_p3) }
  0x18   : > { %174 = vst [vmem:[%s155_s30] sm:$0xf] (%p67_p3), %v173_v0  ;;  %176 = vst [vmem:[%s155_s30 + $0x4] sm:$0xf] (%p67_p3), %v175_v1  ;;  %v177_v2 = vld [vmem:[%s157_s29 + $0x20] sm:$0xf] (%p67_p3) }
  0x19   : > { %v179_v3 = vld [vmem:[%s157_s29 + $0x30] sm:$0xf] (%p67_p3)  ;;  %178 = vst [vmem:[%s155_s30 + $0x8] sm:$0xf] (%p67_p3), %v177_v2 }
  0x1a   : > { %180 = vst [vmem:[%s155_s30 + $0xc] sm:$0xf] (%p67_p3), %v179_v3 }
  0x1b PF: > { %p478_p7 = scmp.ge.s32.totalorder %s631_s18, 1  ;;  %p210_p8 = scmp.lt.s32.totalorder %s631_s18, 9 }
  0x1d   : > { %p211_p9 = pnand %p478_p7, %p210_p8 }
  0x1e   : > { %s217_s4 = sand.u32 (!%p211_p9), 1, %s607_s12   ;;  %p244_p10 = scmp.lt.s32.totalorder (!%p211_p9), %s619_s15, 1 }
  0x1f   : > { %214 = sbr.rel (%p211_p9) target bundleno = 854 (0x356), region = 69  ;;  %s479_s5 = sshll.u32 (!%p211_p9), %s217_s4, 4 }
  0x20   : > { %s219_s24 = scalar_lea.vmem (!%p211_p9), [#allocation5], %s479_s5  ;;  %p483_p11 = scmp.ne.s32.totalorder (!%p211_p9), %s615_s14, 0 }
  0x26   : > { %s779_s15 = smov (!%p244_p10, %s619_s15), 1  ;;  %257 = sbr.rel (%p483_p11) target bundleno = 45 (0x2d), region = 77 }
  0x27   : > { %s480_s6 = sshll.u32 %s779_s15, 2  ;;  %s493_s7 = sshll.u32 %s779_s15, 5  ;;  %vm258_vm0 = vcmask (!%p483_p11), 7168   ;;  %v633_v4 = vmov (!%p483_p11), -1e+30   ;;  %v634_v5 = vmov (!%p483_p11), 0.0  }
  0x28   : > { %s247_s10 = scalar_lea.vmem %s762_s0, %s480_s6  ;;  %s727_s22 = scalar_lea.vmem %s765_s3, %s493_s7  ;;  %259 = vst.msk [vmem:[#allocation3] sm:$0xff] (!%p483_p11), %vm258_vm0, %v633_v4  ;;  %260 = vst.msk [vmem:[#allocation4] sm:$0xff] (!%p483_p11), %vm258_vm0, %v634_v5 }
  0x2d PF: > { %v568_v6 = vld [vmem:[%s219_s24] sm:$0xff]   ;;  %v635_v7 = vmov 0.0   ;;  %v569_v8 = vld [vmem:[%s219_s24 + $0x8] sm:$0xff]   ;;  %vm636_vm1 = vmmov 0   ;;  %vm289_vm2 = vcmask 261120   ;;  %s484_s12 = sshll.u32 %s615_s14, 7 }
  0x2e   : > { %497 = vmatprep.subr.bf16.mxu0 %v635_v7  ;;  %501 = vmatprep.mubr.msk.bf16.mxu0 %vm636_vm1, %v635_v7  ;;  %v262_v9 = vld [vmem:[%s247_s10] sm:$0xf]  ;;  %s267_s15 = sshra.s32 %s484_s12, 7  ;;  %v637_v16 = vmov 0   ;;  %vm356_vm3 = vcmask 7168   ;;  %p490_p12 = scmp.ne.s32.totalorder %s615_s14, 3 }
  0x2f   : > { %498 = vmatpush3.bf16.msra.mxu0 %v568_v6  ;;  %s269_s27 = scalar_lea.vmem %s764_s2, %s267_s15  ;;  %s489_s28 = sshll.u32 %s267_s15, 3  ;;  %567 = vset.pattern.permute.xlu0 %v637_v16  ;;  %v336_v17 = vld [vmem:[#allocation3] sm:$0xff]  ;;  %v340_v27 = vld [vmem:[#allocation4] sm:$0xff]  ;;  %v638_v32 = vmov (!%p490_p12), 0  }
  0x30   : > { %499 = vmatprep.subr.bf16.mxu0 %v635_v7  ;;  %v485_v10 = vld [vmem:[%s269_s27] ss:$0 sm:$0xff]  ;;  %s334_s29 = scalar_lea.vmem [#allocation2], %s489_s28 }
  0x33   : > { %500 = vmatpush3.bf16.msra.mxu0 %v569_v8 }
  0x36   : > { %502 = vmatmul.mubr.msk.bf16.vlgmr.msra.gmra.mrb[0].mxu0 %vm289_vm2, %v262_v9 }
 0x109   : > { %v327_v11 = vpop.f32.mrb[0].mxu0 }
 0x10a   : > { %v328_v12 = vadd.f32 %v485_v10, %v327_v11  ;;  %v503_v13 = vpop.f32.mrb[1].mxu0 }
 0x10b   : > { %v330_v14 = vpop.f32.mrb[2].mxu0 }
 0x10c   : > { %335 = vst [vmem:[%s334_s29] sm:$0xff] %v328_v12  ;;  %v504_v15 = vpop.f32.mrb[3].mxu0  ;;  %337 = vmax.xlane.f32.xlu0 %v328_v12 }
 0x113   : > { %v368_v37 = vld [vmem:[#allocation2] sm:$0xff] (!%p490_p12)  ;;  %v369_v38 = vld [vmem:[#allocation2 + $0x8] sm:$0xff] (!%p490_p12)  ;;  %v370_v39 = vld [vmem:[#allocation2 + $0x10] sm:$0xff] (!%p490_p12) }
 0x114   : > { %v371_v40 = vld [vmem:[#allocation2 + $0x18] sm:$0xff] (!%p490_p12) }
 0x199   : > { %v338_v18 = vpop.xlane.xlu0 %337 }
 0x19a   : > { %v339_v19 = vmax.f32 %v336_v17, %v338_v18 }
 0x19c   : > { %v341_v20 = vsub.f32 %v336_v17, %v339_v19  ;;  %358 = vst.msk [vmem:[#allocation3] sm:$0xff] %vm356_vm3, %v339_v19  ;;  %347 = vperm.xlu0 %567, %v339_v19  }
 0x19e   : > { %v342_v25 = vmul.f32 1.442695, %v341_v20 }
 0x1a0   : > { %574 = vset.pattern.permute.xlu0 (!%p490_p12), %v638_v32 }
 0x1a3   : > { %v363_v34 = vld [vmem:[#allocation3] sm:$0xff] (!%p490_p12) }
 0x21b   : > { %v348_v21 = vpop.permute.xlu0 %347 }
 0x21c   : > { %v350_v22 = vsub.f32 %v328_v12, %v348_v21 }
 0x21e   : > { %v351_v23 = vmul.f32 1.442695, %v350_v22 }
 0x220   : > { %570 = vpow2.f32 %v351_v23 }
 0x221   : > { %572 = vpow2.f32 %v342_v25 }
 0x22a   : > { %v571_v24 = vpop.eup %570 }
 0x22b   : > { %353 = vadd.xlane.f32.xlu1 %v571_v24  ;;  %v573_v26 = vpop.eup %572 }
 0x22c   : > { %v344_v28 = vmul.f32 %v573_v26, %v340_v27 }
 0x2b5   : > { %362 = sbr.rel (%p490_p12) target bundleno = 854 (0x356), region = 81 }
 0x2b8   : > { %v354_v29 = vpop.xlane.xlu1 %353 }
 0x2b9   : > { %v355_v30 = vadd.f32 %v354_v29, %v344_v28 }
 0x2bb   : > { %357 = vst.msk [vmem:[#allocation4] sm:$0xff] %vm356_vm3, %v355_v30 }
 0x2c2   : > { %v364_v31 = vld [vmem:[#allocation4] sm:$0xff] }
 0x2c3   : > { %575 = vlog2.f32 %v364_v31 }
 0x2cd   : > { %v576_v33 = vpop.eup %575 }
 0x2ce   : > { %v366_v35 = vmul.f32 0.6931472, %v576_v33 }
 0x2d0   : > { %v367_v36 = vadd.f32 %v366_v35, %v363_v34 }
 0x2d2   : > { %374 = vperm.xlu0 %574, %v367_v36  }
 0x351   : > { %v375_v41 = vpop.permute.xlu0 %374 }
 0x352   : > { %v377_v42 = vsub.f32 %v368_v37, %v375_v41  ;;  %v378_v43 = vsub.f32 %v369_v38, %v375_v41  ;;  %v379_v44 = vsub.f32 %v370_v39, %v375_v41  ;;  %v380_v45 = vsub.f32 %v371_v40, %v375_v41 }
 0x354   : > { %381 = vst [vmem:[%s727_s22] sm:$0xff] %v377_v42  ;;  %382 = vst [vmem:[%s727_s22 + $0x8] sm:$0xff] %v378_v43 }
 0x355   : > { %383 = vst [vmem:[%s727_s22 + $0x10] sm:$0xff] %v379_v44  ;;  %384 = vst [vmem:[%s727_s22 + $0x18] sm:$0xff] %v380_v45 }
 0x356 PF: > { %s13_s18 = sadd.s32 1, %s631_s18   ;;  %s766_s12 = smov %s611_s13 }
 0x357   : > { %p10_p13 = scmp.ge.s32.totalorder %s13_s18, 10   ;;  %s767_s13 = smov %s708_s23 }
 0x358   : > { %s768_s14 = smov %s623_s16  ;;  %s769_s15 = smov %s627_s17 }
 0x359   : > { %s770_s16 = smov %s773_s19  ;;  %s771_s17 = smov %s777_s20 }
 0x35a   :  { %12 = sbr.rel (!%p10_p13) target bundleno = 4 (0x4), region = 121 }

</bundles_post_ra>
